<compile_context>
chip_gen: v7x
topology: tpu7x:2x2x1
jax: 0.10.0
libtpu: 0.0.40
codegen_flags: <defaults>
</compile_context>

<pallas_src>
import jax
import jax.numpy as jnp
from jax.experimental import pallas as pl
from jax.experimental.pallas import tpu as pltpu


_MXU_ALIGN = 256      # v6e/v7x MXUs are 2x256x256; 128 would half-fill them.
_NEG_BIG = -1e30      # "minus infinity" for padded codebook lanes (kept in f32)


def _round_up(n, m):
    return ((n + m - 1) // m) * m


def _pick_row_tile(n_rows, tm_max=512):
    """Largest tile in {512..8} (<= tm_max) dividing n_rows, preferring a grid
    of >= 2 steps so the 'parallel' row axis can shard across v7x's 2 TCs."""
    candidates = [t for t in (512, 256, 128, 64, 32, 16, 8) if t <= tm_max]
    divisors = [t for t in candidates if n_rows % t == 0]
    if not divisors:
        return min(candidates[-1], n_rows)
    multi = [t for t in divisors if n_rows // t >= 2]
    return multi[0] if multi else divisors[0]


# ----------------------------------------------------------------------------
# Pallas kernel: fused  GELU-MLP (residual) -> output projection ->
#                log_softmax over the (lane-dense, pre-padded) codebook dim.
# ----------------------------------------------------------------------------
def _text2vec_head_kernel(x_ref, w1_ref, b1_ref, w2_ref, b2_ref,
                          wout_ref, bout_ref, o_ref):
    # Activations arrive in bf16 (half the streamed DMA); MXU accumulation and
    # all VPU/EUP math (gelu, residual, log-softmax) stays in f32.
    x_bf = x_ref[...]                                                   # (tm, H) bf16

    h = jnp.dot(x_bf, w1_ref[...],
                preferred_element_type=jnp.float32) + b1_ref[...]       # (tm, F) f32
    h = jax.nn.gelu(h, approximate=True)                                # tanh form -> EUP
    y = jnp.dot(h.astype(jnp.bfloat16), w2_ref[...],
                preferred_element_type=jnp.float32) + b2_ref[...]       # (tm, H) f32
    y = y + x_bf.astype(jnp.float32)                                    # residual, f32

    logits = jnp.dot(y.astype(jnp.bfloat16), wout_ref[...],
                     preferred_element_type=jnp.float32) + bout_ref[...]  # (tm, Cp)

    # Padded codebook lanes carry bout == -1e30 (f32) and zero weight columns,
    # so exp underflows to exactly 0 and the normalization only sees real
    # classes.  (Keep bout in f32 — this trick breaks in bf16/f16.)
    m = jnp.max(logits, axis=-1, keepdims=True)
    z = logits - m
    lse = jnp.log(jnp.sum(jnp.exp(z), axis=-1, keepdims=True))
    o_ref[...] = (z - lse).astype(o_ref.dtype)


def text2vec_head(x, w1, b1, w2, b2, wout, bout, *, tm=512,
                  out_dtype=jnp.bfloat16):
    """x: [N, H] bf16.  w1/w2/wout bf16 (wout pre-padded to a 256-multiple of
    classes at init), biases f32 (bout pre-padded with -1e30).
    Returns log-probs [N8, C_pad]; caller slices rows/classes lazily."""
    N, H = x.shape
    F = w1.shape[1]
    C_pad = wout.shape[1]
    assert H % 128 == 0 and F % 128 == 0, "hidden/ffn must be lane-aligned"
    assert C_pad % 128 == 0, "codebook must be pre-padded lane-dense at init"

    # Row count only needs sublane (8) alignment; pad at most 7 rows.
    N8 = _round_up(N, 8)
    if N8 != N:
        x = jnp.pad(x, ((0, N8 - N), (0, 0)))

    tm_eff = _pick_row_tile(N8, tm)
    grid = (N8 // tm_eff,)

    out_itemsize = jnp.dtype(out_dtype).itemsize

    # --- VMEM budget: tight estimate + headroom, capped generation-aware -----
    weight_vmem = 2 * 2 * (H * F + F * H + H * C_pad)        # bf16, double-buffered
    bias_vmem = 2 * 4 * (F + H + C_pad)                      # f32, double-buffered
    act_vmem = 2 * tm_eff * H * 2 + 2 * tm_eff * C_pad * out_itemsize
    inter_vmem = tm_eff * (F + 2 * H + C_pad) * 4            # h, y, x_f32, logits
    tight = weight_vmem + bias_vmem + act_vmem + inter_vmem
    try:
        vmem_cap = int(pltpu.get_tpu_info().vmem_capacity_bytes)
    except Exception:
        vmem_cap = 64 << 20                                  # v7x per-TC minimum
    vmem_bytes = min(max(tight + (2 << 20), 16 << 20), int(0.75 * vmem_cap))

    # --- advisory cost estimate for XLA's scheduler ---------------------------
    flops = 2 * N8 * (H * F + F * H + H * C_pad)
    transcendentals = N8 * (F + C_pad)
    bytes_accessed = (N8 * H * 2 + N8 * C_pad * out_itemsize
                      + 2 * (H * F + F * H + H * C_pad) + 4 * (F + H + C_pad))
    cost = pl.CostEstimate(flops=int(flops),
                           transcendentals=int(transcendentals),
                           bytes_accessed=int(bytes_accessed))

    # Weights / biases are grid-invariant (constant index_map) so the pipeline
    # fetches them once and keeps them VMEM-resident.  On v7x (64 MiB VMEM) at
    # realistic H/F/C, single-buffering them (pipeline_mode=pl.Buffered(1)) or
    # adding an "arbitrary" grid axis over F with a VMEM accumulator halves /
    # bounds the resident weight footprint; not needed at these sizes.
    full = lambda shape: pl.BlockSpec(shape, lambda i: (0, 0))
    out = pl.pallas_call(
        _text2vec_head_kernel,
        out_shape=jax.ShapeDtypeStruct((N8, C_pad), out_dtype),
        grid=grid,
        in_specs=[
            pl.BlockSpec((tm_eff, H), lambda i: (i, 0)),   # activations, row-tiled
            full((H, F)), full((1, F)),
            full((F, H)), full((1, H)),
            full((H, C_pad)), full((1, C_pad)),
        ],
        out_specs=pl.BlockSpec((tm_eff, C_pad), lambda i: (i, 0)),
        compiler_params=pltpu.CompilerParams(
            dimension_semantics=("parallel",),
            vmem_limit_bytes=vmem_bytes),
        cost_estimate=cost,
    )(x, w1, b1, w2, b2, wout, bout)

    return out   # [N8, C_pad]


# ----------------------------------------------------------------------------
# Synthetic Text2Vec model (deterministic parameters) + JAX glue.
# ----------------------------------------------------------------------------
class Text2VecParams:
    def __init__(self, key, *, num_classes, text_vocab, hidden, ffn):
        k = jax.random.split(key, 7)
        s = 0.02
        self.num_classes = num_classes
        # Embedding tables in bf16 so the embedding sum (kernel input) is
        # already bf16 — no per-call cast, half the streamed activation bytes.
        self.label_emb = (s * jax.random.normal(k[0], (num_classes, hidden))).astype(jnp.bfloat16)
        self.text_emb = (s * jax.random.normal(k[1], (text_vocab, hidden))).astype(jnp.bfloat16)
        # Matmul weights in bf16 (MXU-native); biases in f32.
        self.w1 = (s * jax.random.normal(k[2], (hidden, ffn))).astype(jnp.bfloat16)
        self.b1 = jnp.zeros((1, ffn), jnp.float32)
        self.w2 = (s * jax.random.normal(k[3], (ffn, hidden))).astype(jnp.bfloat16)
        self.b2 = jnp.zeros((1, hidden), jnp.float32)
        # Codebook padding done ONCE here (not per forward call): zero weight
        # columns + -1e30 bias keep the in-kernel log-softmax exact.
        C_pad = _round_up(num_classes, _MXU_ALIGN)
        wout = s * jax.random.normal(k[4], (hidden, num_classes))
        self.wout = jnp.pad(wout, ((0, 0), (0, C_pad - num_classes))).astype(jnp.bfloat16)
        self.bout = jnp.pad(jnp.zeros((1, num_classes), jnp.float32),
                            ((0, 0), (0, C_pad - num_classes)),
                            constant_values=_NEG_BIG)                    # f32 (required)


def _length_regulate(text_embedded, duration, t_frame):
    """Expand per-phone embeddings to per-frame embeddings via durations.
    text_embedded: [T_text, H], duration: [T_text] int32 (sum == t_frame).
    Returns [t_frame, H].  Pure gather glue (kept in plain JAX)."""
    ends = jnp.cumsum(duration)                       # [T_text]
    frame_idx = jnp.arange(t_frame)
    phone_of_frame = jnp.searchsorted(ends, frame_idx, side="right")
    phone_of_frame = jnp.clip(phone_of_frame, 0, text_embedded.shape[0] - 1)
    return text_embedded[phone_of_frame]              # [t_frame, H]


def text2vec_forward(params, label, feat_len, text, text_len, duration,
                     out_dtype=jnp.bfloat16):
    """Mirrors Text2Vec.forward -> transformer(label, feat_len, text, text_len, duration).
    Returns frame-level log-probabilities over the codebook: [B, T_frame, C].
    feat_len / text_len are carried for interface parity (full-length batches here).
    # TODO(synk): padding masks driven by feat_len/text_len and the diffusion
    # timestep conditioning of the real CTXtxt2vec transformer are not modeled.
    """
    B, T_frame = label.shape
    H = params.label_emb.shape[1]
    C = params.num_classes

    content = params.label_emb[label]                                 # [B, T_frame, H] bf16
    text_e = params.text_emb[text]                                    # [B, T_text, H] bf16
    expanded = jax.vmap(_length_regulate, in_axes=(0, 0, None))(
        text_e, duration, T_frame)                                    # [B, T_frame, H]

    x = (content + expanded).reshape(B * T_frame, H)                  # [N, H] bf16
    logp = text2vec_head(x, params.w1, params.b1, params.w2, params.b2,
                         params.wout, params.bout, tm=512,
                         out_dtype=out_dtype)                         # [N8, C_pad]
    # Single lazy slice; consumers that tolerate the padded codebook can take
    # the padded tensor directly.
    return logp[:B * T_frame, :C].reshape(B, T_frame, C)


if __name__ == "__main__":
    key = jax.random.PRNGKey(0)
    kp, kl, kt = jax.random.split(key, 3)

    B, T_frame, T_text = 2, 16, 8
    hidden, ffn = 256, 512              # 256-multiples: fill v6e/v7x 256-wide MXU
    num_classes, text_vocab = 100, 40   # codebook padded to 256 once at init

    params = Text2VecParams(kp, num_classes=num_classes, text_vocab=text_vocab,
                            hidden=hidden, ffn=ffn)

    # batch['label'][0], batch['feat_len'][0], batch['text'][0],
    # batch['text_len'][0], batch['duration'][0]
    label = jax.random.randint(kl, (B, T_frame), 0, num_classes, jnp.int32)
    text = jax.random.randint(kt, (B, T_text), 0, text_vocab, jnp.int32)
    duration = jnp.full((B, T_text), T_frame // T_text, jnp.int32)   # sums to T_frame
    feat_len = jnp.full((B,), T_frame, jnp.int32)
    text_len = jnp.full((B,), T_text, jnp.int32)

    # bf16 output (default) halves the HBM writeback; the demo requests f32 so
    # the log-softmax normalization check below can stay tight.
    out = text2vec_forward(params, label, feat_len, text, text_len, duration,
                           out_dtype=jnp.float32)
    out = jax.block_until_ready(out)

    # Sanity: log-softmax rows must exponentiate-sum to 1 and contain no NaNs.
    row_sums = jnp.exp(out.astype(jnp.float32)).sum(axis=-1)
    assert out.shape == (B, T_frame, num_classes)
    assert bool(jnp.all(jnp.isfinite(out)))
    assert bool(jnp.all(jnp.abs(row_sums - 1.0) < 1e-4))

    print("KERNEL_OK")
</pallas_src>

<mosaic_0001>
module attributes {stable_mosaic.version = 11 : i64} {
  func.func @_text2vec_head_kernel(%arg0: i32, %arg1: memref<16x256xbf16, #tpu.memory_space<vmem>>, %arg2: memref<256x512xbf16, #tpu.memory_space<vmem>>, %arg3: memref<1x512xf32, #tpu.memory_space<vmem>>, %arg4: memref<512x256xbf16, #tpu.memory_space<vmem>>, %arg5: memref<1x256xf32, #tpu.memory_space<vmem>>, %arg6: memref<256x256xbf16, #tpu.memory_space<vmem>>, %arg7: memref<1x256xf32, #tpu.memory_space<vmem>>, %arg8: memref<16x256xf32, #tpu.memory_space<vmem>>) attributes {dimension_semantics = [#tpu.dimension_semantics<parallel>], iteration_bounds = array<i64: 2>, scalar_prefetch = 0 : i64, scratch_operands = 0 : i64, tpu.core_type = #tpu.core_type<tc>, window_params = [{transform_indices = @transform_0, window_bounds = array<i64: 16, 256>}, {pipeline_mode = #tpu.pipeline_mode<synchronous>, transform_indices = @transform_1, window_bounds = array<i64: 256, 512>}, {pipeline_mode = #tpu.pipeline_mode<synchronous>, transform_indices = @transform_2, window_bounds = array<i64: 1, 512>}, {pipeline_mode = #tpu.pipeline_mode<synchronous>, transform_indices = @transform_3, window_bounds = array<i64: 512, 256>}, {pipeline_mode = #tpu.pipeline_mode<synchronous>, transform_indices = @transform_4, window_bounds = array<i64: 1, 256>}, {pipeline_mode = #tpu.pipeline_mode<synchronous>, transform_indices = @transform_5, window_bounds = array<i64: 256, 256>}, {pipeline_mode = #tpu.pipeline_mode<synchronous>, transform_indices = @transform_6, window_bounds = array<i64: 1, 256>}, {transform_indices = @transform_7, window_bounds = array<i64: 16, 256>}]} {
    %c0 = arith.constant 0 : index
    %c0_0 = arith.constant 0 : index
    %0 = vector.load %arg1[%c0, %c0_0] : memref<16x256xbf16, #tpu.memory_space<vmem>>, vector<16x256xbf16>
    %c0_1 = arith.constant 0 : index
    %c0_2 = arith.constant 0 : index
    %1 = vector.load %arg2[%c0_1, %c0_2] : memref<256x512xbf16, #tpu.memory_space<vmem>>, vector<256x512xbf16>
    %cst = arith.constant dense<0.000000e+00> : vector<16x512xf32>
    %2 = tpu.matmul %0, %1, %cst {dimension_numbers = #tpu.dot_dimension_numbers<[1], [0], [0], [1], [0, 0, 1, 1], [], []>} : vector<16x256xbf16>, vector<256x512xbf16>, vector<16x512xf32> -> vector<16x512xf32>
    %c0_3 = arith.constant 0 : index
    %c0_4 = arith.constant 0 : index
    %3 = vector.load %arg3[%c0_3, %c0_4] : memref<1x512xf32, #tpu.memory_space<vmem>>, vector<1x512xf32>
    %4 = vector.broadcast %3 : vector<1x512xf32> to vector<16x512xf32>
    %5 = arith.addf %2, %4 : vector<16x512xf32>
    %6 = arith.mulf %5, %5 : vector<16x512xf32>
    %7 = arith.mulf %5, %6 : vector<16x512xf32>
    %cst_5 = arith.constant 4.471500e-02 : f32
    %8 = vector.broadcast %cst_5 : f32 to vector<16x512xf32>
    %9 = arith.mulf %8, %7 : vector<16x512xf32>
    %10 = arith.addf %5, %9 : vector<16x512xf32>
    %cst_6 = arith.constant 0.797884583 : f32
    %11 = vector.broadcast %cst_6 : f32 to vector<16x512xf32>
    %12 = arith.mulf %11, %10 : vector<16x512xf32>
    %13 = math.tanh %12 : vector<16x512xf32>
    %cst_7 = arith.constant 1.000000e+00 : f32
    %14 = vector.broadcast %cst_7 : f32 to vector<16x512xf32>
    %15 = arith.addf %14, %13 : vector<16x512xf32>
    %cst_8 = arith.constant 5.000000e-01 : f32
    %16 = vector.broadcast %cst_8 : f32 to vector<16x512xf32>
    %17 = arith.mulf %16, %15 : vector<16x512xf32>
    %18 = arith.mulf %5, %17 : vector<16x512xf32>
    %19 = arith.truncf %18 : vector<16x512xf32> to vector<16x512xbf16>
    %c0_9 = arith.constant 0 : index
    %c0_10 = arith.constant 0 : index
    %20 = vector.load %arg4[%c0_9, %c0_10] : memref<512x256xbf16, #tpu.memory_space<vmem>>, vector<512x256xbf16>
    %cst_11 = arith.constant dense<0.000000e+00> : vector<16x256xf32>
    %21 = tpu.matmul %19, %20, %cst_11 {dimension_numbers = #tpu.dot_dimension_numbers<[1], [0], [0], [1], [0, 0, 1, 1], [], []>} : vector<16x512xbf16>, vector<512x256xbf16>, vector<16x256xf32> -> vector<16x256xf32>
    %c0_12 = arith.constant 0 : index
    %c0_13 = arith.constant 0 : index
    %22 = vector.load %arg5[%c0_12, %c0_13] : memref<1x256xf32, #tpu.memory_space<vmem>>, vector<1x256xf32>
    %23 = vector.broadcast %22 : vector<1x256xf32> to vector<16x256xf32>
    %24 = arith.addf %21, %23 : vector<16x256xf32>
    %25 = arith.extf %0 : vector<16x256xbf16> to vector<16x256xf32>
    %26 = arith.addf %24, %25 : vector<16x256xf32>
    %27 = arith.truncf %26 : vector<16x256xf32> to vector<16x256xbf16>
    %c0_14 = arith.constant 0 : index
    %c0_15 = arith.constant 0 : index
    %28 = vector.load %arg6[%c0_14, %c0_15] : memref<256x256xbf16, #tpu.memory_space<vmem>>, vector<256x256xbf16>
    %cst_16 = arith.constant dense<0.000000e+00> : vector<16x256xf32>
    %29 = tpu.matmul %27, %28, %cst_16 {dimension_numbers = #tpu.dot_dimension_numbers<[1], [0], [0], [1], [0, 0, 1, 1], [], []>} : vector<16x256xbf16>, vector<256x256xbf16>, vector<16x256xf32> -> vector<16x256xf32>
    %c0_17 = arith.constant 0 : index
    %c0_18 = arith.constant 0 : index
    %30 = vector.load %arg7[%c0_17, %c0_18] : memref<1x256xf32, #tpu.memory_space<vmem>>, vector<1x256xf32>
    %31 = vector.broadcast %30 : vector<1x256xf32> to vector<16x256xf32>
    %32 = arith.addf %29, %31 : vector<16x256xf32>
    %cst_19 = arith.constant dense<0xFF800000> : vector<16xf32>
    %33 = vector.multi_reduction <maximumf>, %32, %cst_19 [1] : vector<16x256xf32> to vector<16xf32>
    %34 = vector.shape_cast %33 : vector<16xf32> to vector<16x1xf32>
    %35 = vector.broadcast %34 : vector<16x1xf32> to vector<16x256xf32>
    %36 = arith.subf %32, %35 : vector<16x256xf32>
    %37 = math.exp %36 : vector<16x256xf32>
    %cst_20 = arith.constant dense<0.000000e+00> : vector<16xf32>
    %38 = vector.multi_reduction <add>, %37, %cst_20 [1] : vector<16x256xf32> to vector<16xf32>
    %39 = vector.shape_cast %38 : vector<16xf32> to vector<16x1xf32>
    %40 = math.log %39 : vector<16x1xf32>
    %41 = vector.broadcast %40 : vector<16x1xf32> to vector<16x256xf32>
    %42 = arith.subf %36, %41 : vector<16x256xf32>
    %c0_21 = arith.constant 0 : index
    %c0_22 = arith.constant 0 : index
    %43 = vector.load %arg8[%c0_21, %c0_22] : memref<16x256xf32, #tpu.memory_space<vmem>>, vector<16x256xf32>
    tpu.vector_store %arg8[%c0_21, %c0_22], %42 {strides = array<i32>} : memref<16x256xf32, #tpu.memory_space<vmem>>, vector<16x256xf32>,
    return
  }
  func.func @transform_0(%arg0: i32) -> (i32, i32) {
    %c0_i32 = arith.constant 0 : i32
    %c0_i32_0 = arith.constant 0 : i32
    return %arg0, %c0_i32 : i32, i32
  }
  func.func @transform_1(%arg0: i32) -> (i32, i32) {
    %c0_i32 = arith.constant 0 : i32
    %c0_i32_0 = arith.constant 0 : i32
    %c0_i32_1 = arith.constant 0 : i32
    return %c0_i32, %c0_i32_0 : i32, i32
  }
  func.func @transform_2(%arg0: i32) -> (i32, i32) {
    %c0_i32 = arith.constant 0 : i32
    %c0_i32_0 = arith.constant 0 : i32
    %c0_i32_1 = arith.constant 0 : i32
    return %c0_i32, %c0_i32_0 : i32, i32
  }
  func.func @transform_3(%arg0: i32) -> (i32, i32) {
    %c0_i32 = arith.constant 0 : i32
    %c0_i32_0 = arith.constant 0 : i32
    %c0_i32_1 = arith.constant 0 : i32
    return %c0_i32, %c0_i32_0 : i32, i32
  }
  func.func @transform_4(%arg0: i32) -> (i32, i32) {
    %c0_i32 = arith.constant 0 : i32
    %c0_i32_0 = arith.constant 0 : i32
    %c0_i32_1 = arith.constant 0 : i32
    return %c0_i32, %c0_i32_0 : i32, i32
  }
  func.func @transform_5(%arg0: i32) -> (i32, i32) {
    %c0_i32 = arith.constant 0 : i32
    %c0_i32_0 = arith.constant 0 : i32
    %c0_i32_1 = arith.constant 0 : i32
    return %c0_i32, %c0_i32_0 : i32, i32
  }
  func.func @transform_6(%arg0: i32) -> (i32, i32) {
    %c0_i32 = arith.constant 0 : i32
    %c0_i32_0 = arith.constant 0 : i32
    %c0_i32_1 = arith.constant 0 : i32
    return %c0_i32, %c0_i32_0 : i32, i32
  }
  func.func @transform_7(%arg0: i32) -> (i32, i32) {
    %c0_i32 = arith.constant 0 : i32
    %c0_i32_0 = arith.constant 0 : i32
    return %arg0, %c0_i32 : i32, i32
  }
}

</mosaic_0001>

<bundles_post_ra>
// kernel: tpu_custom_call.1
= control target key start
LH: loop header
LB: loop body
LE: loop exit
PB: predicated region body
PF: predicated region fallthrough
CT: control target
= control target key end

     0   :  { %s2968_s0 = inlined_call_operand.hbm [shape: bf16[32,256], index: 0, kind: input, shape index: {}]   ;;  %s2969_s1 = inlined_call_operand.hbm [shape: bf16[256,512], index: 1, kind: input, shape index: {}]   ;;  %s2970_s2 = inlined_call_operand.vmem [shape: f32[1,512], index: 2, kind: input, shape index: {}]   ;;  %s2971_s3 = inlined_call_operand.hbm [shape: bf16[512,256], index: 3, kind: input, shape index: {}]   ;;  %s2972_s4 = inlined_call_operand.vmem [shape: f32[1,256], index: 4, kind: input, shape index: {}]   ;;  %s2973_s5 = inlined_call_operand.hbm [shape: bf16[256,256], index: 5, kind: input, shape index: {}]   ;;  %s2974_s6 = inlined_call_operand.vmem [shape: f32[1,256], index: 6, kind: input, shape index: {}]   ;;  %s2975_s7 = inlined_call_operand.hbm [shape: f32[32,256], index: 7, kind: output, shape index: {}]  }
   0x1   :  { %2980 = sst [smem:[#allocation16_spill]] %s2969_s1 }
   0x2   :  { %12 = vsyncpa [#allocation3], 0 }
   0x3   :  { %14 = vsyncpa [#allocation3 + $0x1], 0 }
   0x4   :  { %15 = vsyncpa [#allocation6], 0 }
   0x5   :  { %16 = vsyncpa [#allocation9], 0 }
   0x6   :  { %17 = vsyncpa [#allocation4], 0 }
   0x7   :  { %19 = vsyncpa [#allocation4 + $0x1], 0  ;;  %s2608_s24 = smov 0   ;;  %s2610_s25 = smov 0  }
   0x8   :  { %s2612_s26 = smov 0   ;;  %s2614_s27 = smov 0  }
   0x9 LB: > { %s2629_s28 = sadd.s32 4294967295, %s2555_s27   ;;  %s1816_s29 = sadd.s32 4294967294, %s2555_s27   ;;  %s2555_s27 = sphi %s2614_s27, %s3003_s27   ;;  %s2551_s26 = sphi %s2612_s26, %s3002_s26   ;;  %s2547_s25 = sphi %s2610_s25, %s3001_s25   ;;  %s2543_s24 = sphi %s2608_s24, %s3000_s24  }
   0xa   : > { %p45_p0 = scmp.ne.s32.totalorder %s2547_s25, %s2543_s24  ;;  %p2976_p1 = scmp.eq.s32.totalorder %s2629_s28, 0 }
   0xb   : > { %p201_p3 = scmp.eq.s32.totalorder %s1816_s29, 1  ;;  %p1817_p5 = scmp.ge.s32.totalorder %s2555_s27, 1 }
   0xc   : > { %p2638_p4 = por %p2976_p1, %p45_p0  ;;  %p208_p7 = scmp.lt.s32.totalorder %s2555_s27, 3 }
   0xd   : > { %p2643_p6 = por %p201_p3, %p45_p0  ;;  %s2557_s10 = smov [#allocation5]  }
   0xe   : > { %s2981_s30 = scalar_select %p2638_p4, 1, 0 }
   0xf   : > { %s2982_s8 = scalar_select %p2643_p6, 1, 0 }
  0x10   : > { %p2648_p8 = pnand %p1817_p5, %p208_p7  ;;  %s220_s11 = sshll.u32 %s2557_s10, 4  ;;  %s2652_s11 = int_to_ptr.vmem [resolvable:$true] %s220_s11 }
  0x11   : > { %2983 = sst [smem:[#allocation15_spill]] %s2982_s8  ;;  %s2558_s13 = smov [#allocation7]  }
  0x12   : > { %s2984_s9 = scalar_select %p2648_p8, 1, 0 }
  0x13   : > { %p2028_p9 = pneg %p2648_p8  ;;  %s236_s14 = sshll.u32 %s2558_s13, 4  ;;  %s2663_s14 = int_to_ptr.vmem [resolvable:$true] %s236_s14 }
  0x14   : > { %s2986_s1 = sld [smem:[#allocation16_spill]] }
  0x15   : > { %p2659_p11 = pnand %p2028_p9, %p2976_p1 }
  0x17   : > { %p2673_p13 = pneg %p2659_p11 }
  0x1a   : > { %s2367_s17 = scalar_lea.hbm %s2986_s1, 8192 }
  0x1b   : > { %p2368_p12 = scmp.ne.s32.totalorder %s2986_s1, %s2367_s17  ;;  %p2374_p5 = scmp.lt.u32.totalorder %s2367_s17, %s2986_s1 }
  0x1d   : > { %p2370_p0 = pnand %p2673_p13, %p2368_p12 }
  0x1f   : > { %p2371_p3 = pneg %p2370_p0 }
  0x21   : > { %p2376_p7 = pnand %p2374_p5, %p2371_p3 }
  0x23   : > { %2379 = shalt.err (!%p2376_p7)
}
  0x24   : > { %s2380_s23 = scalar_lea.vmem %s2652_s11, 8192  ;;  %p2388_p2 = scmp.lt.s32.totalorder %s2652_s11, %s2652_s11 }
  0x25   : > { %p2381_p9 = scmp.ne.s32.totalorder %s2652_s11, %s2380_s23  ;;  %p2389_p6 = scmp.lt.s32.totalorder %s2380_s23, %s2380_s23 }
  0x27   : > { %p2383_p10 = pnand %p2381_p9, %p2673_p13  ;;  %p2390_p12 = por %p2389_p6, %p2388_p2 }
  0x29   : > { %p2384_p1 = pneg %p2383_p10 }
  0x2b   : > { %p2391_p0 = pnand %p2390_p12, %p2384_p1 }
  0x2d   : > { %2394 = shalt.err (!%p2391_p0)
}
  0x2e   : > { %s2559_s29 = smov 256   ;;  %s2560_s10 = smov 16  }
  0x2f   : > { %2031 = dma.hbm_to_vmem [thread:$0]  (!%p2659_p11), %s2986_s1, 8192, %s2652_s11, [#allocation6], %s2559_s29, %s2559_s29, %s2560_s10  }
  0x30   : > { %s2395_s18 = scalar_lea.hbm %s2971_s3, 8192 }
  0x31   : > { %p2396_p2 = scmp.ne.s32.totalorder %s2971_s3, %s2395_s18  ;;  %p2402_p10 = scmp.lt.u32.totalorder %s2395_s18, %s2971_s3 }
  0x33   : > { %p2398_p1 = pnand %p2396_p2, %p2673_p13 }
  0x35   : > { %p2399_p6 = pneg %p2398_p1 }
  0x37   : > { %p2404_p3 = pnand %p2402_p10, %p2399_p6 }
  0x39   : > { %2407 = shalt.err (!%p2404_p3)
}
  0x3a   : > { %s2408_s11 = scalar_lea.vmem %s2663_s14, 8192  ;;  %p2416_p12 = scmp.lt.s32.totalorder %s2663_s14, %s2663_s14 }
  0x3b   : > { %p2409_p5 = scmp.ne.s32.totalorder %s2663_s14, %s2408_s11  ;;  %p2417_p0 = scmp.lt.s32.totalorder %s2408_s11, %s2408_s11 }
  0x3d   : > { %p2411_p7 = pnand %p2409_p5, %p2673_p13  ;;  %p2418_p2 = por %p2417_p0, %p2416_p12 }
  0x3f   : > { %p2412_p9 = pneg %p2411_p7 }
  0x41   : > { %p2419_p1 = pnand %p2418_p2, %p2412_p9 }
  0x43   : > { %2422 = shalt.err (!%p2419_p1)
}
  0x44   : > { %s2561_s29 = smov 128   ;;  %s2562_s10 = smov 8  }
  0x45   : > { %2034 = dma.hbm_to_vmem [thread:$0]  (!%p2659_p11), %s2971_s3, 8192, %s2663_s14, [#allocation6], %s2561_s29, %s2561_s29, %s2562_s10  }
  0x46   : > { %s2563_s16 = smov [#allocation8]   ;;  %s2721_s18 = sadd.s32 1, %s2555_s27  }
  0x47   : > { %s252_s17 = sshll.u32 %s2563_s16, 4  ;;  %s2423_s22 = scalar_lea.hbm %s2973_s5, 4096  ;;  %s253_s17 = int_to_ptr.vmem [resolvable:$true] %s252_s17 }
  0x48   : > { %p2424_p6 = scmp.ne.s32.totalorder %s2973_s5, %s2423_s22  ;;  %p2430_p5 = scmp.lt.u32.totalorder %s2423_s22, %s2973_s5 }
  0x4a   : > { %p2426_p10 = pnand %p2424_p6, %p2673_p13 }
  0x4c   : > { %p2427_p3 = pneg %p2426_p10 }
  0x4e   : > { %p2432_p7 = pnand %p2430_p5, %p2427_p3 }
  0x50   : > { %2435 = shalt.err (!%p2432_p7)
}
  0x51   : > { %s2436_s14 = scalar_lea.vmem %s253_s17, 4096  ;;  %p2444_p2 = scmp.lt.s32.totalorder %s253_s17, %s253_s17 }
  0x52   : > { %p2437_p9 = scmp.ne.s32.totalorder %s253_s17, %s2436_s14  ;;  %p2445_p1 = scmp.lt.s32.totalorder %s2436_s14, %s2436_s14 }
  0x54   : > { %p2439_p12 = pnand %p2437_p9, %p2673_p13  ;;  %p2446_p4 = por %p2445_p1, %p2444_p2 }
  0x56   : > { %p2440_p0 = pneg %p2439_p12 }
  0x58   : > { %p2447_p8 = pnand %p2446_p4, %p2440_p0 }
  0x5a   : > { %2450 = shalt.err (!%p2447_p8)
}
  0x5b   : > { %2037 = dma.hbm_to_vmem [thread:$0]  (!%p2659_p11), %s2973_s5, 4096, %s253_s17, [#allocation9], %s2561_s29, %s2561_s29, %s2562_s10  }
  0x5c   : > { %s29_s20 = ssub.s32 %s2555_s27, %s2721_s18  ;;  %s32_s12 = sadd.s32 1, %s2551_s26 }
  0x5d   : > { %p30_p4 = scmp.eq.s32.totalorder %s29_s20, 0  ;;  %p39_p8 = scmp.ne.s32.totalorder %s2551_s26, %s2547_s25 }
  0x5e   : > { %p40_p13 = scmp.eq.s32.totalorder %s2555_s27, 0  ;;  %p2049_p6 = scmp.lt.s32.totalorder %s2555_s27, 2 }
  0x5f   : > { %s2752_s13 = scalar_select %p30_p4, %s2551_s26, %s32_s12  }
  0x60   : > { %p41_p10 = por %p40_p13, %p39_p8  ;;  %p2988_p3 = scmp.eq.s32.totalorder %s2629_s28, 1 }
  0x61   : > { %s269_s16 = sand.u32 1, %s2551_s26   ;;  %s2001_s19 = sshll.u32 %s2555_s27, 8 }
  0x62   : > { %p2756_p5 = por %p2988_p3, %p39_p8  ;;  %s1822_s21 = sshll.u32 %s269_s16, 4 }
  0x63   : > { %s2765_s17 = scalar_lea.hbm %s2968_s0, %s2001_s19  ;;  %s273_s11 = scalar_lea.vmem [#allocation2], %s1822_s21 }
  0x64   : > { %s281_s14 = sshll.u32 %s273_s11, 4  ;;  %p2767_p11 = pnand %p2049_p6, %p41_p10  ;;  %s2771_s14 = int_to_ptr.vmem [resolvable:$true] %s281_s14 }
  0x65   : > { %s2773_s8 = scalar_lea.sflag [#allocation3], %s269_s16  ;;  %s2451_s20 = scalar_lea.hbm %s2765_s17, 256 }
  0x66   : > { %p2452_p7 = scmp.ne.s32.totalorder %s2765_s17, %s2451_s20  ;;  %p2453_p9 = pneg %p2767_p11 }
  0x67   : > { %s2456_s21 = scalar_lea.hbm %s2968_s0, 512  ;;  %p2457_p2 = scmp.lt.u32.totalorder %s2765_s17, %s2968_s0 }
  0x68   : > { %p2454_p12 = pnand %p2453_p9, %p2452_p7  ;;  %p2458_p1 = scmp.lt.u32.totalorder %s2456_s21, %s2451_s20 }
  0x69   : > { %p2460_p8 = scmp.lt.u32.totalorder %s2451_s20, %s2765_s17 }
  0x6a   : > { %p2455_p0 = pneg %p2454_p12  ;;  %p2459_p4 = por %p2458_p1, %p2457_p2 }
  0x6c   : > { %p2461_p13 = por %p2460_p8, %p2459_p4 }
  0x6e   : > { %p2462_p6 = pnand %p2461_p13, %p2455_p0 }
  0x70   : > { %2465 = shalt.err (!%p2462_p6)
}
  0x71   : > { %s2466_s16 = scalar_lea.vmem %s2771_s14, 256  ;;  %s2564_s11 = smov [#allocation2]  }
  0x72   : > { %p2467_p10 = scmp.ne.s32.totalorder %s2771_s14, %s2466_s16  ;;  %s2471_s12 = sshll.u32 %s2564_s11, 4  ;;  %s2472_s12 = int_to_ptr.vmem [resolvable:$false] %s2471_s12 }
  0x73   : > { %s2473_s19 = scalar_lea.vmem %s2472_s12, 512  ;;  %p2474_p12 = scmp.lt.s32.totalorder %s2771_s14, %s2472_s12 }
  0x74   : > { %p2469_p3 = pnand %p2467_p10, %p2453_p9  ;;  %p2475_p2 = scmp.lt.s32.totalorder %s2473_s19, %s2466_s16 }
  0x76   : > { %p2470_p7 = pneg %p2469_p3  ;;  %p2476_p1 = por %p2475_p2, %p2474_p12 }
  0x78   : > { %p2477_p4 = pnand %p2476_p1, %p2470_p7 }
  0x7a   : > { %2480 = shalt.err (!%p2477_p4)
}
  0x7b   : > { %2041 = dma.hbm_to_vmem [thread:$0]  (!%p2767_p11), %s2765_s17, 256, %s2771_s14, %s2773_s8, %s2561_s29, %s2561_s29, %s2562_s10  }
  0x7c   : > { %p2991_p9 = scmp.ne.s32.totalorder %s2984_s9, 0 }
  0x7d   : > { %s2807_s20 = sand.u32 (!%p2991_p9), 1, %s2547_s25   ;;  %p2992_p0 = scmp.ne.s32.totalorder (!%p2991_p9), %s2981_s30, 0 }
  0x7e   : > { %293 = sbr.rel (%p2991_p9) target bundleno = 1292 (0x50c), region = 48  ;;  %s1827_s21 = sshll.u32 (!%p2991_p9), %s2807_s20, 4 }
  0x7f   : > { %s296_s22 = scalar_lea.sflag (!%p2991_p9), [#allocation3], %s2807_s20  ;;  %s2811_s23 = scalar_lea.vmem (!%p2991_p9), [#allocation2], %s1827_s21 }
  0x85   : > { %2526 = dma.done.wait (%p2992_p0), %s296_s22, 256  }
  0x86   : > { %2528 = vsyncadd (%p2992_p0), %s296_s22, 4294967040  ;;  %p2993_p11 = scmp.eq.s32.totalorder %s2629_s28, 0 }
  0x88   : > { %2530 = dma.done.wait (%p2993_p11), [#allocation6], 16384   ;;  %p2994_p8 = pmov %p2993_p11 }
  0x8a   : > { %2532 = vsyncadd (%p2994_p8), [#allocation6], 4294950912  ;;  %p2995_p13 = pmov %p2994_p8 }
  0x8b   : > { %p2996_p6 = pmov %p2994_p8 }
  0x8c   : > { %2534 = dma.done.wait (%p2995_p13), [#allocation9], 4096  }
  0x8d   : > { %2536 = vsyncadd (%p2996_p6), [#allocation9], 4294963200  ;;  %v2095_v0 = vld [vmem:[#allocation5 + $0x4] ss:$16 sps:$4 sm:$0xff]   ;;  %v2097_v1 = vld [vmem:[#allocation5] ss:$16 sps:$4 sm:$0xff]  }
  0x8e   : > { %762 = vmatprep.subr.bf16.mxu0 %v2095_v0  ;;  %v2098_v2 = vld [vmem:[#allocation5 + $0x24] ss:$16 sps:$4 sm:$0xff]   ;;  %v2100_v3 = vld [vmem:[#allocation5 + $0x20] ss:$16 sps:$4 sm:$0xff]   ;;  %v2122_v9 = vld [vmem:[#allocation5 + $0xc] ss:$16 sps:$4 sm:$0xff]  }
  0x8f   : > { %763 = vmatpush1.bf16.msra.mxu0 %v2097_v1  ;;  %v2101_v4 = vld [vmem:[#allocation5 + $0x44] ss:$16 sps:$4 sm:$0xff]   ;;  %v2103_v5 = vld [vmem:[#allocation5 + $0x40] ss:$16 sps:$4 sm:$0xff]   ;;  %805 = vmatprep.subr.bf16.mxu1 %v2122_v9  ;;  %v2126_v11 = vld [vmem:[#allocation5 + $0x8] ss:$16 sps:$4 sm:$0xff]  }
  0x90   : > { %764 = vmatprep.subr.bf16.mxu0 %v2098_v2  ;;  %v2104_v6 = vld [vmem:[#allocation5 + $0x64] ss:$16 sps:$4 sm:$0xff]   ;;  %v2106_v7 = vld [vmem:[#allocation5 + $0x60] ss:$16 sps:$4 sm:$0xff]   ;;  %v2128_v12 = vld [vmem:[#allocation5 + $0x2c] ss:$16 sps:$4 sm:$0xff]   ;;  %806 = vmatpush1.bf16.msra.mxu1 %v2126_v11 }
  0x91   : > { %v2107_v8 = vld [vmem:[#allocation5 + $0x84] ss:$16 sps:$4 sm:$0xff]   ;;  %v2109_v10 = vld [vmem:[#allocation5 + $0x80] ss:$16 sps:$4 sm:$0xff]   ;;  %v2132_v14 = vld [vmem:[#allocation5 + $0x28] ss:$16 sps:$4 sm:$0xff]   ;;  %807 = vmatprep.subr.bf16.mxu1 %v2128_v12 }
  0x92   : > { %v2110_v13 = vld [vmem:[#allocation5 + $0xa4] ss:$16 sps:$4 sm:$0xff]   ;;  %v2134_v15 = vld [vmem:[#allocation5 + $0x4c] ss:$16 sps:$4 sm:$0xff]   ;;  %v2112_v16 = vld [vmem:[#allocation5 + $0xa0] ss:$16 sps:$4 sm:$0xff]  }
  0x93   : > { %765 = vmatpush1.bf16.msra.mxu0 %v2100_v3  ;;  %v2113_v17 = vld [vmem:[#allocation5 + $0xc4] ss:$16 sps:$4 sm:$0xff]   ;;  %v2138_v18 = vld [vmem:[#allocation5 + $0x48] ss:$16 sps:$4 sm:$0xff]   ;;  %v2140_v19 = vld [vmem:[#allocation5 + $0x6c] ss:$16 sps:$4 sm:$0xff]  }
  0x94   : > { %766 = vmatprep.subr.bf16.mxu0 %v2101_v4  ;;  %808 = vmatpush1.bf16.msra.mxu1 %v2132_v14  ;;  %v2115_v20 = vld [vmem:[#allocation5 + $0xc0] ss:$16 sps:$4 sm:$0xff]   ;;  %v2116_v21 = vld [vmem:[#allocation5 + $0xe4] ss:$16 sps:$4 sm:$0xff]   ;;  %v2144_v22 = vld [vmem:[#allocation5 + $0x68] ss:$16 sps:$4 sm:$0xff]  }
  0x95   : > { %809 = vmatprep.subr.bf16.mxu1 %v2134_v15  ;;  %v2146_v23 = vld [vmem:[#allocation5 + $0x8c] ss:$16 sps:$4 sm:$0xff]   ;;  %v2118_v24 = vld [vmem:[#allocation5 + $0xe0] ss:$16 sps:$4 sm:$0xff]   ;;  %v2119_v25 = vld [vmem:[#allocation5 + $0x104] ss:$16 sps:$4 sm:$0xff]  }
  0x96   : > { %v2150_v26 = vld [vmem:[#allocation5 + $0x88] ss:$16 sps:$4 sm:$0xff]   ;;  %v2152_v27 = vld [vmem:[#allocation5 + $0xac] ss:$16 sps:$4 sm:$0xff]   ;;  %v2121_v28 = vld [vmem:[#allocation5 + $0x100] ss:$16 sps:$4 sm:$0xff]  }
  0x97   : > { %767 = vmatpush1.bf16.msra.mxu0 %v2103_v5  ;;  %v2826_v29 = vld [vmem:[%s2811_s23] sm:$0xff]  ;;  %v2829_v30 = vld [vmem:[%s2811_s23 + $0x8] sm:$0xff]  ;;  %s1831_s1 = sshll.u32 %s2807_s20, 5  ;;  %s2003_s11 = sshll.u32 %s2629_s28, 9 }
  0x98   : > { %768 = vmatprep.subr.bf16.mxu0 %v2104_v6  ;;  %810 = vmatpush1.bf16.msra.mxu1 %v2138_v18  ;;  %v2124_v31 = vld [vmem:[#allocation5 + $0x124] ss:$16 sps:$4 sm:$0xff]   ;;  %v2156_v32 = vld [vmem:[#allocation5 + $0xa8] ss:$16 sps:$4 sm:$0xff]   ;;  %v1833_v33 = vcombine.high %v2826_v29, %v2829_v30  ;;  %v2158_v34 = vld [vmem:[#allocation5 + $0xcc] ss:$16 sps:$4 sm:$0xff]   ;;  %v1832_v0 = vcombine.low %v2826_v29, %v2829_v30  ;;  %s2924_s21 = scalar_lea.hbm %s2975_s7, %s2003_s11 }
  0x99   : > { %811 = vmatprep.subr.bf16.mxu1 %v2140_v19  ;;  %v2127_v35 = vld [vmem:[#allocation5 + $0x120] ss:$16 sps:$4 sm:$0xff]   ;;  %v2130_v36 = vld [vmem:[#allocation5 + $0x144] ss:$16 sps:$4 sm:$0xff]   ;;  %v2162_v37 = vld [vmem:[#allocation5 + $0xc8] ss:$16 sps:$4 sm:$0xff]  }
  0x9a   : > { %794 = vmatprep.mubr.bf16.mxu0 %v1833_v33  ;;  %837 = vmatprep.mubr.bf16.mxu1 %v1833_v33  ;;  %v2165_v38 = vld [vmem:[#allocation5 + $0xec] ss:$16 sps:$4 sm:$0xff]   ;;  %v2133_v39 = vld [vmem:[#allocation5 + $0x140] ss:$16 sps:$4 sm:$0xff]   ;;  %v2136_v40 = vld [vmem:[#allocation5 + $0x164] ss:$16 sps:$4 sm:$0xff]  }
  0x9b   : > { %769 = vmatpush1.bf16.msra.mxu0 %v2106_v7  ;;  %v2168_v41 = vld [vmem:[#allocation5 + $0xe8] ss:$16 sps:$4 sm:$0xff]   ;;  %v2169_v42 = vld [vmem:[#allocation5 + $0x10c] ss:$16 sps:$4 sm:$0xff]   ;;  %v2139_v43 = vld [vmem:[#allocation5 + $0x160] ss:$16 sps:$4 sm:$0xff]  }
  0x9c   : > { %770 = vmatprep.subr.bf16.mxu0 %v2107_v8  ;;  %812 = vmatpush1.bf16.msra.mxu1 %v2144_v22  ;;  %v2142_v44 = vld [vmem:[#allocation5 + $0x184] ss:$16 sps:$4 sm:$0xff]   ;;  %v2171_v45 = vld [vmem:[#allocation5 + $0x108] ss:$16 sps:$4 sm:$0xff]   ;;  %v2172_v46 = vld [vmem:[#allocation5 + $0x12c] ss:$16 sps:$4 sm:$0xff]  }
  0x9d   : > { %813 = vmatprep.subr.bf16.mxu1 %v2146_v23  ;;  %v2145_v47 = vld [vmem:[#allocation5 + $0x180] ss:$16 sps:$4 sm:$0xff]   ;;  %v2148_v48 = vld [vmem:[#allocation5 + $0x1a4] ss:$16 sps:$4 sm:$0xff]   ;;  %v2174_v49 = vld [vmem:[#allocation5 + $0x128] ss:$16 sps:$4 sm:$0xff]  }
  0x9e   : > { %v2175_v50 = vld [vmem:[#allocation5 + $0x14c] ss:$16 sps:$4 sm:$0xff]   ;;  %v2151_v51 = vld [vmem:[#allocation5 + $0x1a0] ss:$16 sps:$4 sm:$0xff]   ;;  %v2154_v52 = vld [vmem:[#allocation5 + $0x1c4] ss:$16 sps:$4 sm:$0xff]  }
  0x9f   : > { %771 = vmatpush1.bf16.msra.mxu0 %v2109_v10  ;;  %v2177_v53 = vld [vmem:[#allocation5 + $0x148] ss:$16 sps:$4 sm:$0xff]   ;;  %v2157_v54 = vld [vmem:[#allocation5 + $0x1c0] ss:$16 sps:$4 sm:$0xff]   ;;  %v2178_v55 = vld [vmem:[#allocation5 + $0x16c] ss:$16 sps:$4 sm:$0xff]  }
  0xa0   : > { %772 = vmatprep.subr.bf16.mxu0 %v2110_v13  ;;  %814 = vmatpush1.bf16.msra.mxu1 %v2150_v26  ;;  %v2160_v56 = vld [vmem:[#allocation5 + $0x1e4] ss:$16 sps:$4 sm:$0xff]   ;;  %v2180_v57 = vld [vmem:[#allocation5 + $0x168] ss:$16 sps:$4 sm:$0xff]   ;;  %v2181_v58 = vld [vmem:[#allocation5 + $0x18c] ss:$16 sps:$4 sm:$0xff]  }
  0xa1   : > { %815 = vmatprep.subr.bf16.mxu1 %v2152_v27  ;;  %v2163_v59 = vld [vmem:[#allocation5 + $0x1e0] ss:$16 sps:$4 sm:$0xff]   ;;  %v2183_v60 = vld [vmem:[#allocation5 + $0x188] ss:$16 sps:$4 sm:$0xff]   ;;  %v2195_v61 = vld [vmem:[#allocation7 + $0x4] ss:$8 sps:$4 sm:$0xff]  }
  0xa2   : > { %v2184_v62 = vld [vmem:[#allocation5 + $0x1ac] ss:$16 sps:$4 sm:$0xff]   ;;  %v2193_v63 = vld [vmem:[#allocation7] ss:$8 sps:$4 sm:$0xff]   ;;  %v2196_v4 = vld [vmem:[#allocation7 + $0x10] ss:$8 sps:$4 sm:$0xff]  }
  0xa3   : > { %773 = vmatpush1.bf16.msra.mxu0 %v2112_v16  ;;  %v2186_v1 = vld [vmem:[#allocation5 + $0x1a8] ss:$16 sps:$4 sm:$0xff]   ;;  %v2198_v2 = vld [vmem:[#allocation7 + $0x14] ss:$8 sps:$4 sm:$0xff]   ;;  %v2201_v6 = vld [vmem:[#allocation7 + $0x24] ss:$8 sps:$4 sm:$0xff]  }
  0xa4   : > { %774 = vmatprep.subr.bf16.mxu0 %v2113_v17  ;;  %816 = vmatpush1.bf16.msra.mxu1 %v2156_v32  ;;  %v2187_v3 = vld [vmem:[#allocation5 + $0x1cc] ss:$16 sps:$4 sm:$0xff]   ;;  %v2189_v5 = vld [vmem:[#allocation5 + $0x1c8] ss:$16 sps:$4 sm:$0xff]   ;;  %s341_s8 = scalar_lea.vmem [#allocation10], %s1831_s1  ;;  %s1700_s22 = scalar_lea.sflag [#allocation4], %s2807_s20 }
  0xa5   : > { %817 = vmatprep.subr.bf16.mxu1 %v2158_v34  ;;  %v2190_v7 = vld [vmem:[#allocation5 + $0x1ec] ss:$16 sps:$4 sm:$0xff]   ;;  %v2199_v8 = vld [vmem:[#allocation7 + $0x20] ss:$8 sps:$4 sm:$0xff]   ;;  %v2202_v11 = vld [vmem:[#allocation7 + $0x30] ss:$8 sps:$4 sm:$0xff]  }
  0xa6   : > { %v2192_v9 = vld [vmem:[#allocation5 + $0x1e8] ss:$16 sps:$4 sm:$0xff]   ;;  %v2204_v10 = vld [vmem:[#allocation7 + $0x34] ss:$8 sps:$4 sm:$0xff]   ;;  %v2207_v12 = vld [vmem:[#allocation7 + $0x44] ss:$8 sps:$4 sm:$0xff]  }
  0xa7   : > { %775 = vmatpush1.bf16.msra.mxu0 %v2115_v20  ;;  %v2205_v13 = vld [vmem:[#allocation7 + $0x40] ss:$8 sps:$4 sm:$0xff]   ;;  %v2210_v14 = vld [vmem:[#allocation7 + $0x54] ss:$8 sps:$4 sm:$0xff]   ;;  %v2208_v15 = vld [vmem:[#allocation7 + $0x50] ss:$8 sps:$4 sm:$0xff]  }
  0xa8   : > { %776 = vmatprep.subr.bf16.mxu0 %v2116_v21  ;;  %818 = vmatpush1.bf16.msra.mxu1 %v2162_v37  ;;  %v2213_v16 = vld [vmem:[#allocation7 + $0x64] ss:$8 sps:$4 sm:$0xff]   ;;  %v2211_v17 = vld [vmem:[#allocation7 + $0x60] ss:$8 sps:$4 sm:$0xff]   ;;  %v2216_v18 = vld [vmem:[#allocation7 + $0x74] ss:$8 sps:$4 sm:$0xff]  }
  0xa9   : > { %819 = vmatprep.subr.bf16.mxu1 %v2165_v38  ;;  %v2214_v19 = vld [vmem:[#allocation7 + $0x70] ss:$8 sps:$4 sm:$0xff]   ;;  %v2219_v20 = vld [vmem:[#allocation7 + $0x84] ss:$8 sps:$4 sm:$0xff]   ;;  %v2217_v21 = vld [vmem:[#allocation7 + $0x80] ss:$8 sps:$4 sm:$0xff]  }
  0xaa   : > { %v2222_v22 = vld [vmem:[#allocation7 + $0x94] ss:$8 sps:$4 sm:$0xff]   ;;  %v2220_v23 = vld [vmem:[#allocation7 + $0x90] ss:$8 sps:$4 sm:$0xff]   ;;  %v2237_v34 = vld [vmem:[#allocation7 + $0xe4] ss:$8 sps:$4 sm:$0xff]  }
  0xab   : > { %777 = vmatpush1.bf16.msra.mxu0 %v2118_v24  ;;  %v2225_v24 = vld [vmem:[#allocation7 + $0xa4] ss:$8 sps:$4 sm:$0xff]   ;;  %v2228_v26 = vld [vmem:[#allocation7 + $0xb4] ss:$8 sps:$4 sm:$0xff]   ;;  %v2226_v27 = vld [vmem:[#allocation7 + $0xb0] ss:$8 sps:$4 sm:$0xff]  }
  0xac   : > { %778 = vmatprep.subr.bf16.mxu0 %v2119_v25  ;;  %820 = vmatpush1.bf16.msra.mxu1 %v2168_v41  ;;  %v2223_v25 = vld [vmem:[#allocation7 + $0xa0] ss:$8 sps:$4 sm:$0xff]   ;;  %v2234_v32 = vld [vmem:[#allocation7 + $0xd4] ss:$8 sps:$4 sm:$0xff]   ;;  %v2232_v33 = vld [vmem:[#allocation7 + $0xd0] ss:$8 sps:$4 sm:$0xff]  }
  0xad   : > { %821 = vmatprep.subr.bf16.mxu1 %v2169_v42  ;;  %v2238_v37 = vld [vmem:[#allocation7 + $0xf0] ss:$8 sps:$4 sm:$0xff]   ;;  %v2243_v38 = vld [vmem:[#allocation7 + $0x104] ss:$8 sps:$4 sm:$0xff]   ;;  %v2294_v41 = vld [vmem:[#allocation8 + $0x14] ss:$8 sps:$4 sm:$0xff]  }
  0xae   : > { %v2292_v42 = vld [vmem:[#allocation8 + $0x10] ss:$8 sps:$4 sm:$0xff]   ;;  %s1714_s16 = sshll.u32 %s341_s8, 4  ;;  %s2919_s16 = int_to_ptr.vmem [resolvable:$true] %s1714_s16 }
  0xaf   : > { %779 = vmatpush1.bf16.msra.mxu0 %v2121_v28  ;;  %v2231_v28 = vld [vmem:[#allocation7 + $0xc4] ss:$8 sps:$4 sm:$0xff]   ;;  %s2481_s28 = scalar_lea.vmem %s2919_s16, 512 }
  0xb0   : > { %780 = vmatprep.subr.bf16.mxu0 %v2124_v31  ;;  %822 = vmatpush1.bf16.msra.mxu1 %v2171_v45  ;;  %v2229_v31 = vld [vmem:[#allocation7 + $0xc0] ss:$8 sps:$4 sm:$0xff]   ;;  %v2300_v45 = vld [vmem:[#allocation8 + $0x34] ss:$8 sps:$4 sm:$0xff]   ;;  %p2482_p10 = scmp.ne.s32.totalorder %s2919_s16, %s2481_s28 }
  0xb1   : > { %823 = vmatprep.subr.bf16.mxu1 %v2172_v46  ;;  %v2298_v46 = vld [vmem:[#allocation8 + $0x30] ss:$8 sps:$4 sm:$0xff]  }
  0xb2   : > { %p2483_p3 = pnand %p2482_p10, %p2756_p5 }
  0xb3   : > { %781 = vmatpush1.bf16.msra.mxu0 %v2127_v35  ;;  %v2235_v35 = vld [vmem:[#allocation7 + $0xe0] ss:$8 sps:$4 sm:$0xff]  }
  0xb4   : > { %782 = vmatprep.subr.bf16.mxu0 %v2130_v36  ;;  %824 = vmatpush1.bf16.msra.mxu1 %v2174_v49  ;;  %v2240_v36 = vld [vmem:[#allocation7 + $0xf4] ss:$8 sps:$4 sm:$0xff]   ;;  %v2301_v49 = vld [vmem:[#allocation8 + $0x40] ss:$8 sps:$4 sm:$0xff]   ;;  %p2484_p7 = pneg %p2483_p3 }
  0xb5   : > { %825 = vmatprep.subr.bf16.mxu1 %v2175_v50  ;;  %v2306_v50 = vld [vmem:[#allocation8 + $0x54] ss:$8 sps:$4 sm:$0xff]  }
  0xb7   : > { %783 = vmatpush1.bf16.msra.mxu0 %v2133_v39  ;;  %v2289_v39 = vld [vmem:[#allocation8] ss:$8 sps:$4 sm:$0xff]  }
  0xb8   : > { %784 = vmatprep.subr.bf16.mxu0 %v2136_v40  ;;  %826 = vmatpush1.bf16.msra.mxu1 %v2177_v53  ;;  %v2291_v40 = vld [vmem:[#allocation8 + $0x4] ss:$8 sps:$4 sm:$0xff]  }
  0xb9   : > { %827 = vmatprep.subr.bf16.mxu1 %v2178_v55  ;;  %v2309_v53 = vld [vmem:[#allocation8 + $0x64] ss:$8 sps:$4 sm:$0xff]   ;;  %v410_v55 = vld [vmem:[%s2970_s2] sm:$0xf] }
  0xbb   : > { %785 = vmatpush1.bf16.msra.mxu0 %v2139_v43  ;;  %v2297_v43 = vld [vmem:[#allocation8 + $0x24] ss:$8 sps:$4 sm:$0xff]  }
  0xbc   : > { %786 = vmatprep.subr.bf16.mxu0 %v2142_v44  ;;  %828 = vmatpush1.bf16.msra.mxu1 %v2180_v57  ;;  %v2295_v44 = vld [vmem:[#allocation8 + $0x20] ss:$8 sps:$4 sm:$0xff]  }
  0xbd   : > { %829 = vmatprep.subr.bf16.mxu1 %v2181_v58  ;;  %v2307_v57 = vld [vmem:[#allocation8 + $0x60] ss:$8 sps:$4 sm:$0xff]   ;;  %v2312_v58 = vld [vmem:[#allocation8 + $0x74] ss:$8 sps:$4 sm:$0xff]  }
  0xbf   : > { %787 = vmatpush1.bf16.msra.mxu0 %v2145_v47  ;;  %v2303_v47 = vld [vmem:[#allocation8 + $0x44] ss:$8 sps:$4 sm:$0xff]  }
  0xc0   : > { %788 = vmatprep.subr.bf16.mxu0 %v2148_v48  ;;  %830 = vmatpush1.bf16.msra.mxu1 %v2183_v60  ;;  %v412_v48 = vlaneseq }
  0xc1   : > { %831 = vmatprep.subr.bf16.mxu1 %v2184_v62 }
  0xc3   : > { %789 = vmatpush1.bf16.msra.mxu0 %v2151_v51  ;;  %v413_v51 = vshrl.u32 %v412_v48, 7  ;;  %v2327_v48 = vld [vmem:[#allocation8 + $0xc4] ss:$8 sps:$4 sm:$0xff]  }
  0xc4   : > { %790 = vmatprep.subr.bf16.mxu0 %v2154_v52  ;;  %832 = vmatpush1.bf16.msra.mxu1 %v2186_v1  ;;  %v2304_v52 = vld [vmem:[#allocation8 + $0x50] ss:$8 sps:$4 sm:$0xff]  }
  0xc5   : > { %833 = vmatprep.subr.bf16.mxu1 %v2187_v3 }
  0xc7   : > { %791 = vmatpush1.bf16.msra.mxu0 %v2157_v54  ;;  %v2835_v54 = vsub.s32 0, %v413_v51 }
  0xc8   : > { %792 = vmatprep.subr.bf16.mxu0 %v2160_v56  ;;  %834 = vmatpush1.bf16.msra.mxu1 %v2189_v5  ;;  %v2840_v56 = vsub.s32 1, %v413_v51 }
  0xc9   : > { %835 = vmatprep.subr.bf16.mxu1 %v2190_v7  ;;  %v2313_v7 = vld [vmem:[#allocation8 + $0x80] ss:$8 sps:$4 sm:$0xff]  }
  0xca   : > { %v419_v60 = vrot.slane %v410_v55, %v2840_v56 }
  0xcb   : > { %793 = vmatpush1.bf16.msra.mxu0 %v2163_v59  ;;  %v415_v59 = vrot.slane %v410_v55, %v2835_v54 }
  0xcc   : > { %1320 = vmatprep.subr.bf16.mxu0 %v2195_v61  ;;  %836 = vmatpush1.bf16.msra.mxu1 %v2192_v9  ;;  %v2310_v61 = vld [vmem:[#allocation8 + $0x70] ss:$8 sps:$4 sm:$0xff]  }
  0xcd   : > { %1620 = vmatprep.subr.bf16.mxu1 %v2291_v40 }
  0xce   : > { %795 = vmatmul.mubr.bf16.vlgmr.msra.gmra.mrb[0].mxu0 %v1832_v0 }
  0xcf   : > { %1321 = vmatpush1.bf16.msra.mxu0 %v2193_v63  ;;  %838 = vmatmul.mubr.bf16.vlgmr.msra.gmra.mrb[0].mxu1 %v1832_v0  ;;  %v2315_v63 = vld [vmem:[#allocation8 + $0x84] ss:$8 sps:$4 sm:$0xff]  }
  0xd0   : > { %1322 = vmatprep.subr.bf16.mxu0 %v2198_v2  ;;  %1621 = vmatpush1.bf16.msra.mxu1 %v2289_v39 }
  0xd1   : > { %1622 = vmatprep.subr.bf16.mxu1 %v2294_v41 }
  0xd3   : > { %1323 = vmatpush1.bf16.msra.mxu0 %v2196_v4 }
  0xd4   : > { %1324 = vmatprep.subr.bf16.mxu0 %v2201_v6  ;;  %1623 = vmatpush1.bf16.msra.mxu1 %v2292_v42 }
  0xd5   : > { %1624 = vmatprep.subr.bf16.mxu1 %v2297_v43 }
  0xd7   : > { %1325 = vmatpush1.bf16.msra.mxu0 %v2199_v8 }
  0xd8   : > { %1326 = vmatprep.subr.bf16.mxu0 %v2204_v10  ;;  %1625 = vmatpush1.bf16.msra.mxu1 %v2295_v44  ;;  %v2318_v10 = vld [vmem:[#allocation8 + $0x94] ss:$8 sps:$4 sm:$0xff]   ;;  %v2322_v44 = vld [vmem:[#allocation8 + $0xb0] ss:$8 sps:$4 sm:$0xff]  }
  0xd9   : > { %1626 = vmatprep.subr.bf16.mxu1 %v2300_v45 }
  0xdb   : > { %1327 = vmatpush1.bf16.msra.mxu0 %v2202_v11 }
  0xdc   : > { %1328 = vmatprep.subr.bf16.mxu0 %v2207_v12  ;;  %1627 = vmatpush1.bf16.msra.mxu1 %v2298_v46 }
  0xdd   : > { %1628 = vmatprep.subr.bf16.mxu1 %v2303_v47 }
  0xdf   : > { %1329 = vmatpush1.bf16.msra.mxu0 %v2205_v13 }
  0xe0   : > { %1330 = vmatprep.subr.bf16.mxu0 %v2210_v14  ;;  %1629 = vmatpush1.bf16.msra.mxu1 %v2301_v49 }
  0xe1   : > { %1630 = vmatprep.subr.bf16.mxu1 %v2306_v50 }
  0xe3   : > { %1331 = vmatpush1.bf16.msra.mxu0 %v2208_v15  ;;  %v422_v15 = vsub.s32 2, %v413_v51 }
  0xe4   : > { %1332 = vmatprep.subr.bf16.mxu0 %v2213_v16  ;;  %1631 = vmatpush1.bf16.msra.mxu1 %v2304_v52 }
  0xe5   : > { %1632 = vmatprep.subr.bf16.mxu1 %v2309_v53 }
  0xe7   : > { %1333 = vmatpush1.bf16.msra.mxu0 %v2211_v17 }
  0xe8   : > { %1334 = vmatprep.subr.bf16.mxu0 %v2216_v18  ;;  %1633 = vmatpush1.bf16.msra.mxu1 %v2307_v57  ;;  %v426_v18 = vsub.s32 3, %v413_v51  ;;  %v2325_v57 = vld [vmem:[#allocation8 + $0xc0] ss:$8 sps:$4 sm:$0xff]  }
  0xe9   : > { %1634 = vmatprep.subr.bf16.mxu1 %v2312_v58 }
  0xeb   : > { %1335 = vmatpush1.bf16.msra.mxu0 %v2214_v19  ;;  %v2316_v19 = vld [vmem:[#allocation8 + $0x90] ss:$8 sps:$4 sm:$0xff]  }
  0xec   : > { %1336 = vmatprep.subr.bf16.mxu0 %v2219_v20  ;;  %1635 = vmatpush1.bf16.msra.mxu1 %v2310_v61 }
  0xed   : > { %1636 = vmatprep.subr.bf16.mxu1 %v2315_v63 }
  0xef   : > { %1337 = vmatpush1.bf16.msra.mxu0 %v2217_v21 }
  0xf0   : > { %1338 = vmatprep.subr.bf16.mxu0 %v2222_v22  ;;  %1637 = vmatpush1.bf16.msra.mxu1 %v2313_v7  ;;  %v2321_v22 = vld [vmem:[#allocation8 + $0xa4] ss:$8 sps:$4 sm:$0xff]   ;;  %v2328_v7 = vld [vmem:[#allocation8 + $0xd0] ss:$8 sps:$4 sm:$0xff]  }
  0xf1   : > { %1638 = vmatprep.subr.bf16.mxu1 %v2318_v10 }
  0xf3   : > { %1339 = vmatpush1.bf16.msra.mxu0 %v2220_v23 }
  0xf4   : > { %1340 = vmatprep.subr.bf16.mxu0 %v2225_v24  ;;  %1639 = vmatpush1.bf16.msra.mxu1 %v2316_v19 }
  0xf5   : > { %1640 = vmatprep.subr.bf16.mxu1 %v2321_v22 }
  0xf7   : > { %1341 = vmatpush1.bf16.msra.mxu0 %v2223_v25 }
  0xf8   : > { %1342 = vmatprep.subr.bf16.mxu0 %v2228_v26 }
  0xfb   : > { %1343 = vmatpush1.bf16.msra.mxu0 %v2226_v27  ;;  %v423_v27 = vrot.slane %v410_v55, %v422_v15 }
  0xfc   : > { %1344 = vmatprep.subr.bf16.mxu0 %v2231_v28 }
  0xff   : > { %1345 = vmatpush1.bf16.msra.mxu0 %v2229_v31 }
 0x100   : > { %1346 = vmatprep.subr.bf16.mxu0 %v2234_v32  ;;  %v427_v32 = vrot.slane %v410_v55, %v426_v18 }
 0x103   : > { %1347 = vmatpush1.bf16.msra.mxu0 %v2232_v33  ;;  %v2319_v33 = vld [vmem:[#allocation8 + $0xa0] ss:$8 sps:$4 sm:$0xff]  }
 0x104   : > { %1348 = vmatprep.subr.bf16.mxu0 %v2237_v34  ;;  %1641 = vmatpush1.bf16.msra.mxu1 %v2319_v33 }
 0x107   : > { %1349 = vmatpush1.bf16.msra.mxu0 %v2235_v35 }
 0x108   : > { %1350 = vmatprep.subr.bf16.mxu0 %v2240_v36  ;;  %v2324_v36 = vld [vmem:[#allocation8 + $0xb4] ss:$8 sps:$4 sm:$0xff]  }
 0x109   : > { %1642 = vmatprep.subr.bf16.mxu1 %v2324_v36 }
 0x10a   : > { %1643 = vmatpush1.bf16.msra.mxu1 %v2322_v44 }
 0x10b   : > { %1351 = vmatpush1.bf16.msra.mxu0 %v2238_v37  ;;  %1644 = vmatprep.subr.bf16.mxu1 %v2327_v48 }
 0x10c   : > { %1363 = vmatprep.subr.bf16.mxu0 %v2243_v38 }
 0x10e   : > { %1645 = vmatpush1.bf16.msra.mxu1 %v2325_v57 }
 0x1a1   : > { %v796_v62 = vpop.f32.mrb[0].mxu0 }
 0x1a2   : > { %v2844_v0 = vadd.f32 %v796_v62, %v415_v59  ;;  %v798_v1 = vpop.f32.mrb[1].mxu0  ;;  %v839_v38 = vpop.f32.mrb[0].mxu1 }
 0x1a3   : > { %v2846_v2 = vadd.f32 %v798_v1, %v419_v60  ;;  %v800_v3 = vpop.f32.mrb[2].mxu0  ;;  %v2868_v40 = vadd.f32 %v839_v38, %v423_v27  ;;  %v841_v41 = vpop.f32.mrb[1].mxu1 }
 0x1a4   : > { %v848_v4 = vmul.f32 %v2844_v0, %v2844_v0  ;;  %v2850_v5 = vadd.f32 %v800_v3, %v415_v59  ;;  %v802_v6 = vpop.f32.mrb[3].mxu0  ;;  %v2870_v42 = vadd.f32 %v841_v41, %v427_v32  ;;  %v843_v43 = vpop.f32.mrb[2].mxu1 }
 0x1a5   : > { %v849_v8 = vmul.f32 %v2846_v2, %v2846_v2  ;;  %v2854_v9 = vadd.f32 %v802_v6, %v419_v60  ;;  %v850_v45 = vmul.f32 %v2868_v40, %v2868_v40  ;;  %v2874_v46 = vadd.f32 %v843_v43, %v423_v27  ;;  %v845_v47 = vpop.f32.mrb[3].mxu1  ;;  %v2330_v60 = vld [vmem:[#allocation8 + $0xd4] ss:$8 sps:$4 sm:$0xff]  }
 0x1a6   : > { %v856_v11 = vmul.f32 %v848_v4, %v2844_v0  ;;  %v852_v12 = vmul.f32 %v2850_v5, %v2850_v5  ;;  %v851_v49 = vmul.f32 %v2870_v42, %v2870_v42  ;;  %v2878_v50 = vadd.f32 %v845_v47, %v427_v32  ;;  %1646 = vmatprep.subr.bf16.mxu1 %v2330_v60  ;;  %v2255_v60 = vld [vmem:[#allocation7 + $0x144] ss:$8 sps:$4 sm:$0xff]  }
 0x1a7   : > { %v857_v13 = vmul.f32 %v849_v8, %v2846_v2  ;;  %v853_v14 = vmul.f32 %v2854_v9, %v2854_v9  ;;  %v858_v51 = vmul.f32 %v850_v45, %v2868_v40  ;;  %v854_v52 = vmul.f32 %v2874_v46, %v2874_v46  ;;  %1647 = vmatpush1.bf16.msra.mxu1 %v2328_v7  ;;  %v2268_v7 = vld [vmem:[#allocation7 + $0x190] ss:$8 sps:$4 sm:$0xff]  }
 0x1a8   : > { %v864_v16 = vmul.f32 0.044715, %v856_v11  ;;  %v860_v17 = vmul.f32 %v852_v12, %v2850_v5  ;;  %v859_v53 = vmul.f32 %v851_v49, %v2870_v42  ;;  %v855_v55 = vmul.f32 %v2878_v50, %v2878_v50  ;;  %v2247_v49 = vld [vmem:[#allocation7 + $0x120] ss:$8 sps:$4 sm:$0xff]  }
 0x1a9   : > { %v865_v20 = vmul.f32 0.044715, %v857_v13  ;;  %v861_v21 = vmul.f32 %v853_v14, %v2854_v9  ;;  %v866_v58 = vmul.f32 0.044715, %v858_v51  ;;  %v862_v59 = vmul.f32 %v854_v52, %v2874_v46  ;;  %v2252_v51 = vld [vmem:[#allocation7 + $0x134] ss:$8 sps:$4 sm:$0xff]  }
 0x1aa   : > { %v872_v23 = vadd.f32 %v864_v16, %v2844_v0  ;;  %v868_v24 = vmul.f32 0.044715, %v860_v17  ;;  %v867_v61 = vmul.f32 0.044715, %v859_v53  ;;  %v863_v62 = vmul.f32 %v855_v55, %v2878_v50 }
 0x1ab   : > { %v873_v25 = vadd.f32 %v865_v20, %v2846_v2  ;;  %v869_v26 = vmul.f32 0.044715, %v861_v21  ;;  %v874_v63 = vadd.f32 %v866_v58, %v2868_v40  ;;  %v870_v1 = vmul.f32 0.044715, %v862_v59  ;;  %v2250_v58 = vld [vmem:[#allocation7 + $0x130] ss:$8 sps:$4 sm:$0xff]  }
 0x1ac   : > { %v880_v28 = vmul.f32 0.7978846, %v872_v23  ;;  %v876_v31 = vadd.f32 %v868_v24, %v2850_v5  ;;  %v875_v4 = vadd.f32 %v867_v61, %v2870_v42  ;;  %v871_v6 = vmul.f32 0.044715, %v863_v62  ;;  %v2253_v61 = vld [vmem:[#allocation7 + $0x140] ss:$8 sps:$4 sm:$0xff]  }
 0x1ad   : > { %v881_v34 = vmul.f32 0.7978846, %v873_v25  ;;  %v877_v35 = vadd.f32 %v869_v26, %v2854_v9  ;;  %v882_v11 = vmul.f32 0.7978846, %v874_v63  ;;  %v878_v12 = vadd.f32 %v870_v1, %v2874_v46  ;;  %v2258_v62 = vld [vmem:[#allocation7 + $0x154] ss:$8 sps:$4 sm:$0xff]  }
 0x1ae   : > { %2337 = vtanh.f32 %v880_v28  ;;  %v884_v37 = vmul.f32 0.7978846, %v876_v31  ;;  %v883_v15 = vmul.f32 0.7978846, %v875_v4  ;;  %v879_v16 = vadd.f32 %v871_v6, %v2878_v50  ;;  %v2256_v63 = vld [vmem:[#allocation7 + $0x150] ss:$8 sps:$4 sm:$0xff]  }
 0x1af   : > { %2339 = vtanh.f32 %v881_v34  ;;  %v885_v39 = vmul.f32 0.7978846, %v877_v35  ;;  %v886_v20 = vmul.f32 0.7978846, %v878_v12  ;;  %v2241_v34 = vld [vmem:[#allocation7 + $0x100] ss:$8 sps:$4 sm:$0xff]  }
 0x1b0   : > { %2341 = vtanh.f32 %v884_v37  ;;  %v887_v23 = vmul.f32 0.7978846, %v879_v16  ;;  %v2246_v35 = vld [vmem:[#allocation7 + $0x114] ss:$8 sps:$4 sm:$0xff]   ;;  %v2262_v1 = vld [vmem:[#allocation7 + $0x170] ss:$8 sps:$4 sm:$0xff]  }
 0x1b1   : > { %2343 = vtanh.f32 %v885_v39  ;;  %v2244_v39 = vld [vmem:[#allocation7 + $0x110] ss:$8 sps:$4 sm:$0xff]   ;;  %v2265_v4 = vld [vmem:[#allocation7 + $0x180] ss:$8 sps:$4 sm:$0xff]   ;;  %v2270_v6 = vld [vmem:[#allocation7 + $0x194] ss:$8 sps:$4 sm:$0xff]  }
 0x1b2   : > { %2345 = vtanh.f32 %v882_v11  ;;  %v2276_v11 = vld [vmem:[#allocation7 + $0x1b4] ss:$8 sps:$4 sm:$0xff]   ;;  %v2274_v12 = vld [vmem:[#allocation7 + $0x1b0] ss:$8 sps:$4 sm:$0xff]  }
 0x1b3   : > { %2347 = vtanh.f32 %v883_v15  ;;  %v2282_v15 = vld [vmem:[#allocation7 + $0x1d4] ss:$8 sps:$4 sm:$0xff]   ;;  %v2280_v16 = vld [vmem:[#allocation7 + $0x1d0] ss:$8 sps:$4 sm:$0xff]  }
 0x1b4   : > { %2349 = vtanh.f32 %v886_v20  ;;  %v2286_v20 = vld [vmem:[#allocation7 + $0x1f0] ss:$8 sps:$4 sm:$0xff]  }
 0x1b5   : > { %2351 = vtanh.f32 %v887_v23  ;;  %v2336_v23 = vld [vmem:[#allocation8 + $0xf4] ss:$8 sps:$4 sm:$0xff]  }
 0x1b8   : > { %v2338_v3 = vpop.eup %2337 }
 0x1b9   : > { %v2340_v8 = vpop.eup %2339  ;;  %v896_v10 = vadd.f32 1.0, %v2338_v3  ;;  %v2267_v3 = vld [vmem:[#allocation7 + $0x184] ss:$8 sps:$4 sm:$0xff]  }
 0x1ba   : > { %v2342_v13 = vpop.eup %2341  ;;  %v897_v14 = vadd.f32 1.0, %v2340_v8  ;;  %v2273_v8 = vld [vmem:[#allocation7 + $0x1a4] ss:$8 sps:$4 sm:$0xff]  }
 0x1bb   : > { %v2344_v17 = vpop.eup %2343  ;;  %v904_v18 = vmul.f32 0.5, %v896_v10  ;;  %v900_v19 = vadd.f32 1.0, %v2342_v13  ;;  %v2271_v10 = vld [vmem:[#allocation7 + $0x1a0] ss:$8 sps:$4 sm:$0xff]   ;;  %v2279_v13 = vld [vmem:[#allocation7 + $0x1c4] ss:$8 sps:$4 sm:$0xff]  }
 0x1bc   : > { %v901_v21 = vadd.f32 1.0, %v2344_v17  ;;  %v905_v22 = vmul.f32 0.5, %v897_v14  ;;  %v2346_v36 = vpop.eup %2345  ;;  %v2277_v14 = vld [vmem:[#allocation7 + $0x1c0] ss:$8 sps:$4 sm:$0xff]   ;;  %v2285_v17 = vld [vmem:[#allocation7 + $0x1e4] ss:$8 sps:$4 sm:$0xff]  }
 0x1bd   : > { %v908_v24 = vmul.f32 0.5, %v900_v19  ;;  %v912_v26 = vmul.f32 %v904_v18, %v2844_v0  ;;  %v2348_v37 = vpop.eup %2347  ;;  %v898_v38 = vadd.f32 1.0, %v2346_v36  ;;  %v2249_v0 = vld [vmem:[#allocation7 + $0x124] ss:$8 sps:$4 sm:$0xff]   ;;  %v2283_v18 = vld [vmem:[#allocation7 + $0x1e0] ss:$8 sps:$4 sm:$0xff]  }
 0x1be   : > { %v909_v25 = vmul.f32 0.5, %v901_v21  ;;  %v913_v28 = vmul.f32 %v905_v22, %v2846_v2  ;;  %v2350_v41 = vpop.eup %2349  ;;  %v899_v43 = vadd.f32 1.0, %v2348_v37  ;;  %v2288_v19 = vld [vmem:[#allocation7 + $0x1f4] ss:$8 sps:$4 sm:$0xff]   ;;  %v2333_v21 = vld [vmem:[#allocation8 + $0xe4] ss:$8 sps:$4 sm:$0xff]  }
 0x1bf   : > { %v916_v27 = vmul.f32 %v908_v24, %v2850_v5  ;;  %v2352_v5 = vpop.eup %2351  ;;  %v906_v44 = vmul.f32 0.5, %v898_v38  ;;  %v902_v2 = vadd.f32 1.0, %v2350_v41  ;;  %v2331_v22 = vld [vmem:[#allocation8 + $0xe0] ss:$8 sps:$4 sm:$0xff]   ;;  %1648 = vmatprep.subr.bf16.mxu1 %v2333_v21  ;;  %v2334_v24 = vld [vmem:[#allocation8 + $0xf0] ss:$8 sps:$4 sm:$0xff]  }
 0x1c0   : > { %v917_v31 = vmul.f32 %v909_v25, %v2854_v9  ;;  %v903_v45 = vadd.f32 1.0, %v2352_v5  ;;  %v907_v9 = vmul.f32 0.5, %v899_v43  ;;  %1649 = vmatpush1.bf16.msra.mxu1 %v2331_v22  ;;  %v988_v25 = vld [vmem:[%s2972_s4] sm:$0x3] }
 0x1c1   : > { %v920_v32 = vpack.c.bf16 %v916_v27, %v912_v26  ;;  %v2897_v47 = vmul.f32 %v906_v44, %v2868_v40  ;;  %v910_v48 = vmul.f32 0.5, %v902_v2  ;;  %1650 = vmatprep.subr.bf16.mxu1 %v2336_v23  ;;  %v993_v26 = vrot.slane %v988_v25, %v2835_v54  ;;  %v2365_v36 = vld [vmem:[%s2811_s23] sm:$0xff] }
 0x1c2   : > { %v921_v33 = vpack.c.bf16 %v917_v31, %v913_v28  ;;  %v911_v52 = vmul.f32 0.5, %v903_v45  ;;  %v915_v53 = vmul.f32 %v907_v9, %v2870_v42  ;;  %v2261_v42 = vld [vmem:[#allocation7 + $0x164] ss:$8 sps:$4 sm:$0xff]   ;;  %v997_v27 = vrot.slane %v988_v25, %v2840_v56 }
 0x1c3   : > { %v918_v55 = vmul.f32 %v910_v48, %v2874_v46  ;;  %v2259_v46 = vld [vmem:[#allocation7 + $0x160] ss:$8 sps:$4 sm:$0xff]   ;;  %v1407_v37 = vunpack.c.h.bf16 %v2365_v36 }
 0x1c4   : > { %1352 = vmatprep.mubr.bf16.mxu0 %v921_v33  ;;  %v919_v57 = vmul.f32 %v911_v52, %v2878_v50  ;;  %v2264_v50 = vld [vmem:[#allocation7 + $0x174] ss:$8 sps:$4 sm:$0xff]   ;;  %1651 = vmatpush1.bf16.msra.mxu1 %v2334_v24 }
 0x1c5   : > { %1353 = vmatmul.mubr.bf16.vlgmr.msra.gmra.mrb[4].mxu0 %v920_v32  ;;  %v922_v59 = vpack.c.bf16 %v918_v55, %v2897_v47  ;;  %v1406_v32 = vunpack.c.l.bf16 %v2826_v29  ;;  %v1448_v29 = vld [vmem:[%s2974_s6] sm:$0x3] }
 0x1c6   : > { %1364 = vmatpush1.bf16.msra.mxu0 %v2241_v34  ;;  %v923_v40 = vpack.c.bf16 %v919_v57, %v915_v53  ;;  %v1408_v34 = vunpack.c.l.bf16 %v2829_v30  ;;  %v1453_v30 = vrot.slane %v1448_v29, %v2835_v54 }
 0x1c7   : > { %1365 = vmatprep.subr.bf16.mxu0 %v2246_v35 }
 0x1c8   : > { %1395 = vmatprep.mubr.bf16.mxu0 %v923_v40 }
 0x1ca   : > { %1366 = vmatpush1.bf16.msra.mxu0 %v2244_v39  ;;  %v2366_v39 = vld [vmem:[%s2811_s23 + $0x8] sm:$0xff]  ;;  %s2565_s23 = smov [#allocation10]  }
 0x1cb   : > { %1367 = vmatprep.subr.bf16.mxu0 %v2249_v0  ;;  %v1409_v41 = vunpack.c.h.bf16 %v2366_v39  ;;  %s2485_s30 = sshll.u32 %s2565_s23, 4  ;;  %s2486_s30 = int_to_ptr.vmem [resolvable:$false] %s2485_s30 }
 0x1cc   : > { %s2487_s9 = scalar_lea.vmem %s2486_s30, 1024  ;;  %p2488_p12 = scmp.lt.s32.totalorder %s2919_s16, %s2486_s30 }
 0x1cd   : > { %p2489_p2 = scmp.lt.s32.totalorder %s2487_s9, %s2481_s28 }
 0x1ce   : > { %1368 = vmatpush1.bf16.msra.mxu0 %v2247_v49  ;;  %v1457_v49 = vrot.slane %v1448_v29, %v2840_v56 }
 0x1cf   : > { %1369 = vmatprep.subr.bf16.mxu0 %v2252_v51  ;;  %p2490_p1 = por %p2489_p2, %p2488_p12 }
 0x1d1   : > { %p2491_p4 = pnand %p2490_p1, %p2484_p7 }
 0x1d2   : > { %1370 = vmatpush1.bf16.msra.mxu0 %v2250_v58 }
 0x1d3   : > { %1371 = vmatprep.subr.bf16.mxu0 %v2255_v60 }
 0x1d6   : > { %1372 = vmatpush1.bf16.msra.mxu0 %v2253_v61 }
 0x1d7   : > { %1373 = vmatprep.subr.bf16.mxu0 %v2258_v62 }
 0x1da   : > { %1374 = vmatpush1.bf16.msra.mxu0 %v2256_v63 }
 0x1db   : > { %1375 = vmatprep.subr.bf16.mxu0 %v2261_v42 }
 0x1de   : > { %1376 = vmatpush1.bf16.msra.mxu0 %v2259_v46 }
 0x1df   : > { %1377 = vmatprep.subr.bf16.mxu0 %v2264_v50 }
 0x1e2   : > { %1378 = vmatpush1.bf16.msra.mxu0 %v2262_v1 }
 0x1e3   : > { %1379 = vmatprep.subr.bf16.mxu0 %v2267_v3 }
 0x1e6   : > { %1380 = vmatpush1.bf16.msra.mxu0 %v2265_v4 }
 0x1e7   : > { %1381 = vmatprep.subr.bf16.mxu0 %v2270_v6 }
 0x1ea   : > { %1382 = vmatpush1.bf16.msra.mxu0 %v2268_v7 }
 0x1eb   : > { %1383 = vmatprep.subr.bf16.mxu0 %v2273_v8 }
 0x1ee   : > { %1384 = vmatpush1.bf16.msra.mxu0 %v2271_v10 }
 0x1ef   : > { %1385 = vmatprep.subr.bf16.mxu0 %v2276_v11 }
 0x1f2   : > { %1386 = vmatpush1.bf16.msra.mxu0 %v2274_v12 }
 0x1f3   : > { %1387 = vmatprep.subr.bf16.mxu0 %v2279_v13 }
 0x1f6   : > { %1388 = vmatpush1.bf16.msra.mxu0 %v2277_v14 }
 0x1f7   : > { %1389 = vmatprep.subr.bf16.mxu0 %v2282_v15 }
 0x1fa   : > { %1390 = vmatpush1.bf16.msra.mxu0 %v2280_v16 }
 0x1fb   : > { %1391 = vmatprep.subr.bf16.mxu0 %v2285_v17 }
 0x1fe   : > { %1392 = vmatpush1.bf16.msra.mxu0 %v2283_v18 }
 0x1ff   : > { %1393 = vmatprep.subr.bf16.mxu0 %v2288_v19 }
 0x202   : > { %1394 = vmatpush1.bf16.msra.mxu0 %v2286_v20 }
 0x205   : > { %1396 = vmatmul.mubr.bf16.vlgmr.msra.gmra.mrb[4].mxu0 %v922_v59 }
 0x2d8   : > { %v1397_v28 = vpop.f32.mrb[4].mxu0 }
 0x2d9   : > { %v2004_v31 = vadd.f32 %v1397_v28, %v993_v26  ;;  %v1399_v33 = vpop.f32.mrb[5].mxu0 }
 0x2da   : > { %v2005_v35 = vadd.f32 %v1399_v33, %v997_v27  ;;  %v1401_v38 = vpop.f32.mrb[6].mxu0 }
 0x2db   : > { %v2006_v0 = vadd.f32 %v1401_v38, %v993_v26  ;;  %v1403_v43 = vpop.f32.mrb[7].mxu0  ;;  %v1410_v44 = vadd.f32 %v2004_v31, %v1406_v32 }
 0x2dc   : > { %v2007_v5 = vadd.f32 %v1403_v43, %v997_v27  ;;  %v1411_v45 = vadd.f32 %v2005_v35, %v1407_v37 }
 0x2dd   : > { %v1412_v2 = vadd.f32 %v2006_v0, %v1408_v34 }
 0x2de   : > { %v1413_v9 = vadd.f32 %v2007_v5, %v1409_v41 }
 0x2df   : > { %v1414_v47 = vpack.c.bf16 %v1412_v2, %v1410_v44 }
 0x2e0   : > { %v1415_v48 = vpack.c.bf16 %v1413_v9, %v1411_v45 }
 0x2e2   : > { %1652 = vmatprep.mubr.bf16.mxu1 %v1415_v48 }
 0x2e3   : > { %1653 = vmatmul.mubr.bf16.vlgmr.msra.gmra.mrb[4].mxu1 %v1414_v47 }
 0x3b6   : > { %v1654_v51 = vpop.f32.mrb[4].mxu1 }
 0x3b7   : > { %v1655_v52 = vadd.f32 %v1654_v51, %v1453_v30  ;;  %v1656_v53 = vpop.f32.mrb[5].mxu1 }
 0x3b8   : > { %v1657_v55 = vadd.f32 %v1656_v53, %v1457_v49  ;;  %v1658_v57 = vpop.f32.mrb[6].mxu1 }
 0x3b9   : > { %v1660_v58 = vpop.f32.mrb[7].mxu1  ;;  %v1659_v59 = vadd.f32 %v1658_v57, %v1453_v30 }
 0x3ba   : > { %v1661_v60 = vadd.f32 %v1660_v58, %v1457_v49  ;;  %v1663_v40 = vmax.f32 %v1655_v52, %v1657_v55 }
 0x3bc   : > { %1664 = vmax.xlane.f32.xlu0 %v1663_v40  ;;  %v1666_v61 = vmax.f32 %v1659_v59, %v1661_v60 }
 0x3c0   : > { %1667 = vmax.xlane.f32.xlu0 %v1666_v61 }
 0x449   : > { %v1665_v62 = vpop.xlane.xlu0 %1664 }
 0x44a   : > { %v1669_v63 = vsub.f32 %v1655_v52, %v1665_v62  ;;  %v1670_v42 = vsub.f32 %v1657_v55, %v1665_v62 }
 0x44c   : > { %v1673_v46 = vmul.f32 1.442695, %v1669_v63  ;;  %v1675_v50 = vmul.f32 1.442695, %v1670_v42 }
 0x44d   : > { %v1668_v54 = vpop.xlane.xlu0 %1667 }
 0x44e   : > { %2353 = vpow2.f32 %v1673_v46  ;;  %v1671_v56 = vsub.f32 %v1659_v59, %v1668_v54  ;;  %v1672_v1 = vsub.f32 %v1661_v60, %v1668_v54 }
 0x44f   : > { %2355 = vpow2.f32 %v1675_v50 }
 0x450   : > { %v1677_v3 = vmul.f32 1.442695, %v1671_v56  ;;  %v1679_v4 = vmul.f32 1.442695, %v1672_v1 }
 0x452   : > { %2357 = vpow2.f32 %v1677_v3 }
 0x453   : > { %2359 = vpow2.f32 %v1679_v4 }
 0x458   : > { %v2354_v6 = vpop.eup %2353 }
 0x459   : > { %v2356_v7 = vpop.eup %2355 }
 0x45a   : > { %v1681_v8 = vadd.f32 %v2356_v7, %v2354_v6 }
 0x45c   : > { %v2358_v10 = vpop.eup %2357  ;;  %1682 = vadd.xlane.f32.xlu1 %v1681_v8 }
 0x45d   : > { %v2360_v11 = vpop.eup %2359 }
 0x45e   : > { %v1684_v12 = vadd.f32 %v2360_v11, %v2358_v10 }
 0x460   : > { %1685 = vadd.xlane.f32.xlu1 %v1684_v12 }
 0x4e9   : > { %v1683_v13 = vpop.xlane.xlu1 %1682 }
 0x4ea   : > { %2361 = vlog2.f32 %v1683_v13 }
 0x4ed   : > { %v1686_v14 = vpop.xlane.xlu1 %1685 }
 0x4ee   : > { %2363 = vlog2.f32 %v1686_v14 }
 0x4f4   : > { %v2362_v15 = vpop.eup %2361 }
 0x4f5   : > { %v1688_v16 = vmul.f32 0.6931472, %v2362_v15 }
 0x4f7   : > { %v1691_v17 = vsub.f32 %v1669_v63, %v1688_v16  ;;  %v1692_v18 = vsub.f32 %v1670_v42, %v1688_v16 }
 0x4f8   : > { %v2364_v19 = vpop.eup %2363 }
 0x4f9   : > { %1695 = vst [vmem:[%s341_s8] sm:$0xff] %v1691_v17  ;;  %1696 = vst [vmem:[%s341_s8 + $0x8] sm:$0xff] %v1692_v18  ;;  %v1690_v20 = vmul.f32 0.6931472, %v2364_v19 }
 0x4fb   : > { %v1693_v21 = vsub.f32 %v1671_v56, %v1690_v20  ;;  %v1694_v22 = vsub.f32 %v1672_v1, %v1690_v20 }
 0x4fd   : > { %1697 = vst [vmem:[%s341_s8 + $0x10] sm:$0xff] %v1693_v21  ;;  %1698 = vst [vmem:[%s341_s8 + $0x18] sm:$0xff] %v1694_v22 }
 0x4fe   : > { %2494 = shalt.err (!%p2491_p4)
}
 0x4ff   : > { %s2495_s29 = scalar_lea.hbm %s2924_s21, 512  ;;  %s2499_s14 = scalar_lea.hbm %s2975_s7, 1024 }
 0x500   : > { %p2496_p9 = scmp.ne.s32.totalorder %s2924_s21, %s2495_s29  ;;  %p2500_p8 = scmp.lt.u32.totalorder %s2924_s21, %s2975_s7 }
 0x501   : > { %p2501_p13 = scmp.lt.u32.totalorder %s2499_s14, %s2495_s29  ;;  %p2503_p10 = scmp.lt.u32.totalorder %s2495_s29, %s2924_s21 }
 0x502   : > { %p2497_p0 = pnand %p2496_p9, %p2756_p5 }
 0x503   : > { %p2502_p6 = por %p2501_p13, %p2500_p8 }
 0x504   : > { %p2498_p11 = pneg %p2497_p0 }
 0x505   : > { %p2504_p3 = por %p2503_p10, %p2502_p6 }
 0x507   : > { %p2505_p7 = pnand %p2504_p3, %p2498_p11 }
 0x509   : > { %2508 = shalt.err (!%p2505_p7)
}
 0x50a   : > { %s2566_s11 = smov 256   ;;  %s2567_s12 = smov 16  }
 0x50b   : > { %2026 = dma.vmem_to_hbm [thread:$0]  (%p2756_p5), %s2919_s16, 512, %s2924_s21, %s1700_s22, %s2566_s11, %s2566_s11, %s2567_s12  }
 0x50c PF: > { %s2997_s19 = sld [smem:[#allocation15_spill]]  ;;  %s1729_s28 = sand.u32 1, %s2543_s24  }
 0x50d   : > { %p2999_p2 = scmp.ge.s32.totalorder %s2555_s27, 2  ;;  %s1730_s23 = scalar_lea.sflag [#allocation4], %s1729_s28 }
 0x512   : > { %p2998_p12 = scmp.ne.s32.totalorder %s2997_s19, 0 }
 0x514   : > { %p2043_p1 = pnand %p2999_p2, %p2998_p12 }
 0x516   : > { %2538 = dma.done.wait (!%p2043_p1), %s1730_s23, 512  }
 0x517   : > { %2540 = vsyncadd (!%p2043_p1), %s1730_s23, 4294966784  ;;  %p22_p4 = scmp.ge.s32.totalorder %s2721_s18, 4   ;;  %s3000_s24 = smov %s2547_s25 }
 0x518   : > { %s3001_s25 = smov %s2551_s26  ;;  %s3002_s26 = smov %s2752_s13 }
 0x519   : > { %s3003_s27 = smov %s2721_s18  ;;  %24 = sbr.rel (!%p22_p4) target bundleno = 9 (0x9), region = 105 }
 0x520   :  { %1735 = vsyncpa [#allocation3], 1 }
 0x521   :  { %1737 = vsyncpa [#allocation3 + $0x1], 1 }
 0x522   :  { %1738 = vsyncpa [#allocation6], 1 }
 0x523   :  { %1739 = vsyncpa [#allocation9], 1 }
 0x524   :  { %1740 = vsyncpa [#allocation4], 1 }
 0x525   :  { %1742 = vsyncpa [#allocation4 + $0x1], 1 }

</bundles_post_ra>
